<compile_context>
chip_gen: v7x
topology: tpu7x:2x2x1
jax: 0.10.0
libtpu: 0.0.40
codegen_flags: <defaults>
</compile_context>

<pallas_src>
from functools import partial

import jax
import jax.numpy as jnp
from jax.experimental import pallas as pl
from jax.experimental.pallas import tpu as pltpu


_LANE = 128             # vreg lane width (fast axis)
_SUBLANE = 8            # f32 sublane count
_MAX_BLOCK_ROWS = 2048  # 2048 rows x 128 lanes x 4 B = 1 MiB per f32 block


def _round_up(x: int, m: int) -> int:
    return ((x + m - 1) // m) * m


def _avg_reward_baseline_kernel(bval_ref, rewards_ref, baseline_ref, psum_ref,
                                *, valid_rows):
    """
    bval_ref     : SMEM f32[1]               precomputed baseline value
    rewards_ref  : VMEM f32[block_rows, 128] this block's rewards (zero-padded tail)
    baseline_ref : VMEM f32[block_rows, 128] output: baseline_value broadcast
    psum_ref     : VMEM f32[8, 128]          output: per-lane partial sums in sublane 0
    valid_rows   : static int                number of valid rows of the whole array
    """
    block_rows = rewards_ref.shape[0]
    bval = bval_ref[0]

    # Lane+sublane dense splat -> full unmasked vector stores.
    baseline_ref[...] = jnp.full(baseline_ref.shape, bval, dtype=baseline_ref.dtype)

    # Per-block partial sum.  The array itself is padded with explicit zeros only
    # up to a multiple of 8 rows, so those contribute nothing.  Rows that exist
    # only because the last grid block overhangs the array (OOB garbage in the
    # input buffer) are masked out; the static branch disappears when every
    # block is full.
    block = rewards_ref[...]
    if valid_rows % block_rows != 0:
        row_idx = (pl.program_id(0) * block_rows
                   + jax.lax.broadcasted_iota(jnp.int32, block.shape, 0))
        block = jnp.where(row_idx < valid_rows, block, 0.0)
    lane_partials = jnp.sum(block, axis=0, keepdims=True)            # (1, 128)

    # Per-lane partials in sublane 0, zeros elsewhere -> wrapper reduce is a
    # plain jnp.sum over the tiny psum output.
    sub = jax.lax.broadcasted_iota(jnp.int32, psum_ref.shape, 0)
    psum_ref[...] = jnp.where(
        sub == 0, jnp.broadcast_to(lane_partials, psum_ref.shape), 0.0
    ).astype(psum_ref.dtype)


@partial(jax.jit, static_argnames=("max_block_rows",))
def average_reward_baseline(rewards, cumulative_reward, num_rewards,
                            max_block_rows=_MAX_BLOCK_ROWS):
    """
    rewards           : f32[N]   reward vector for this episode
    cumulative_reward : f32[]    running cumulative reward (state before this call)
    num_rewards       : i32[]    running reward count      (state before this call)
    returns           : (baseline f32[N], new_cumulative_reward f32[], new_num_rewards i32[])
    """
    n = rewards.shape[0]
    rewards = rewards.astype(jnp.float32)
    cum = cumulative_reward.astype(jnp.float32)
    num = num_rewards.astype(jnp.int32)

    # baseline_value = cumulative_reward / num_rewards (ZeroDivisionError -> 0.0).
    bval = jnp.where(
        num > 0,
        cum / jnp.maximum(num.astype(jnp.float32), 1.0),
        jnp.float32(0.0),
    )

    # (rows, 128) lane/sublane-dense layout; pad only to a multiple of
    # 8 * 128 = 1024 elements (<= 1023 zeros), skipped entirely when aligned.
    rows = max(_round_up(pl.cdiv(n, _LANE), _SUBLANE), _SUBLANE)
    padded_n = rows * _LANE
    if padded_n == n:
        rewards2d = rewards.reshape(rows, _LANE)
    else:
        rewards2d = jnp.pad(rewards, (0, padded_n - n)).reshape(rows, _LANE)

    # Single-block fast path when everything fits in one large block; otherwise
    # large fixed-size blocks with a masked ragged last block (no rounding of the
    # total row count up to a whole block -> no block-sized padding traffic).
    block_rows = min(max_block_rows, rows)
    num_blocks = pl.cdiv(rows, block_rows)

    kernel = partial(_avg_reward_baseline_kernel, valid_rows=rows)

    baseline2d, psums = pl.pallas_call(
        kernel,
        out_shape=(
            jax.ShapeDtypeStruct((rows, _LANE), jnp.float32),
            jax.ShapeDtypeStruct((num_blocks * _SUBLANE, _LANE), jnp.float32),
        ),
        grid=(num_blocks,),
        in_specs=[
            pl.BlockSpec(memory_space=pltpu.MemorySpace.SMEM),     # baseline scalar
            pl.BlockSpec((block_rows, _LANE), lambda i: (i, 0)),   # rewards (pipelined)
        ],
        out_specs=(
            pl.BlockSpec((block_rows, _LANE), lambda i: (i, 0)),   # baseline values
            pl.BlockSpec((_SUBLANE, _LANE), lambda i: (i, 0)),     # per-block partial sums
        ),
        compiler_params=pltpu.CompilerParams(
            dimension_semantics=("parallel",),     # blocks independent -> both TCs on v7x
            vmem_limit_bytes=32 * 1024 * 1024,     # ~4 MiB actually used; safe on all gens
        ),
    )(bval.reshape(1), rewards2d)

    if padded_n == n:
        baseline = baseline2d.reshape(n)
    else:
        baseline = baseline2d.reshape(padded_n)[:n]

    # Tiny reduce over per-block per-lane partials + running-state update.
    reward_sum = jnp.sum(psums)
    new_cum = cum + reward_sum
    new_num = num + jnp.int32(n)
    return baseline, new_cum, new_num


if __name__ == "__main__":
    key = jax.random.PRNGKey(0)
    k1, k2, k3, k4 = jax.random.split(key, 4)

    seq = 8
    rewards_ep1 = jax.random.normal(k1, (seq,), dtype=jnp.float32)
    rewards_ep2 = jax.random.normal(k2, (seq,), dtype=jnp.float32)

    # Module state starts at cumulative_reward = 0.0, num_rewards = 0.
    cum = jnp.float32(0.0)
    num = jnp.int32(0)

    # Episode 1: num_rewards == 0 -> ZeroDivisionError branch -> all-zero baseline.
    baseline1, cum, num = average_reward_baseline(rewards_ep1, cum, num)
    baseline1, cum, num = jax.block_until_ready((baseline1, cum, num))

    # Episode 2: baseline == mean of episode-1 rewards, broadcast to (seq,).
    baseline2, cum, num = average_reward_baseline(rewards_ep2, cum, num)
    baseline2, cum, num = jax.block_until_ready((baseline2, cum, num))

    ref1 = jnp.zeros((seq,), dtype=jnp.float32)
    ref2 = jnp.full((seq,), jnp.sum(rewards_ep1) / seq, dtype=jnp.float32)
    assert baseline1.shape == (seq,) and baseline1.dtype == jnp.float32
    assert baseline2.shape == (seq,) and baseline2.dtype == jnp.float32
    assert jnp.allclose(baseline1, ref1, atol=1e-6)
    assert jnp.allclose(baseline2, ref2, atol=1e-5)
    assert int(num) == 2 * seq
    assert jnp.allclose(cum, jnp.sum(rewards_ep1) + jnp.sum(rewards_ep2), atol=1e-5)

    # Aligned episode (n % 1024 == 0): single-block fast path, no pad / no slice.
    n_aligned = 1024
    rewards_aligned = jax.random.normal(k3, (n_aligned,), dtype=jnp.float32)
    expected_bval = cum / num.astype(jnp.float32)
    baseline3, cum, num = average_reward_baseline(rewards_aligned, cum, num)
    baseline3, cum, num = jax.block_until_ready((baseline3, cum, num))
    assert baseline3.shape == (n_aligned,) and baseline3.dtype == jnp.float32
    assert jnp.allclose(baseline3, jnp.full((n_aligned,), expected_bval, jnp.float32), atol=1e-5)

    # Ragged multi-block path with a small block cap: exercises gridding, the
    # <=1023-element padding, and in-kernel masking of the overhanging last block.
    n_ragged = 20000  # rows=160, block_rows=48 -> 4 blocks, last block 16/48 rows valid
    rewards_ragged = jax.random.normal(k4, (n_ragged,), dtype=jnp.float32)
    expected_bval = cum / num.astype(jnp.float32)
    baseline4, cum, num = average_reward_baseline(rewards_ragged, cum, num,
                                                  max_block_rows=48)
    baseline4, cum, num = jax.block_until_ready((baseline4, cum, num))
    assert baseline4.shape == (n_ragged,) and baseline4.dtype == jnp.float32
    assert jnp.allclose(baseline4, jnp.full((n_ragged,), expected_bval, jnp.float32), atol=1e-5)
    exp_cum = (jnp.sum(rewards_ep1) + jnp.sum(rewards_ep2)
               + jnp.sum(rewards_aligned) + jnp.sum(rewards_ragged))
    assert jnp.allclose(cum, exp_cum, rtol=1e-4, atol=1e-2)
    assert int(num) == 2 * seq + n_aligned + n_ragged

    print("KERNEL_OK")
</pallas_src>

<mosaic_0001>
module attributes {stable_mosaic.version = 11 : i64} {
  func.func @_avg_reward_baseline_kernel(%arg0: i32, %arg1: memref<1xf32, #tpu.memory_space<smem>>, %arg2: memref<8x128xf32, #tpu.memory_space<vmem>>, %arg3: memref<8x128xf32, #tpu.memory_space<vmem>>, %arg4: memref<8x128xf32, #tpu.memory_space<vmem>>) attributes {dimension_semantics = [#tpu.dimension_semantics<parallel>], iteration_bounds = array<i64: 1>, scalar_prefetch = 0 : i64, scratch_operands = 0 : i64, tpu.core_type = #tpu.core_type<tc>, window_params = [{transform_indices = @transform_0, window_bounds = array<i64: 1>}, {transform_indices = @transform_1, window_bounds = array<i64: 8, 128>}, {transform_indices = @transform_2, window_bounds = array<i64: 8, 128>}, {transform_indices = @transform_3, window_bounds = array<i64: 8, 128>}]} {
    %c0 = arith.constant 0 : index
    %0 = memref.load %arg1[%c0] : memref<1xf32, #tpu.memory_space<smem>>
    %1 = vector.broadcast %0 : f32 to vector<8x128xf32>
    %c0_0 = arith.constant 0 : index
    %c0_1 = arith.constant 0 : index
    %2 = vector.load %arg3[%c0_0, %c0_1] : memref<8x128xf32, #tpu.memory_space<vmem>>, vector<8x128xf32>
    tpu.vector_store %arg3[%c0_0, %c0_1], %1 {strides = array<i32>} : memref<8x128xf32, #tpu.memory_space<vmem>>, vector<8x128xf32>,
    %c0_2 = arith.constant 0 : index
    %c0_3 = arith.constant 0 : index
    %3 = vector.load %arg2[%c0_2, %c0_3] : memref<8x128xf32, #tpu.memory_space<vmem>>, vector<8x128xf32>
    %cst = arith.constant dense<0.000000e+00> : vector<128xf32>
    %4 = vector.multi_reduction <add>, %3, %cst [0] : vector<8x128xf32> to vector<128xf32>
    %5 = vector.shape_cast %4 : vector<128xf32> to vector<1x128xf32>
    %6 = tpu.iota {dimensions = array<i32: 0>} : vector<8x128xi32>
    %c0_i32 = arith.constant 0 : i32
    %7 = vector.broadcast %c0_i32 : i32 to vector<8x128xi32>
    %8 = arith.cmpi eq, %6, %7 : vector<8x128xi32>
    %9 = vector.shape_cast %5 : vector<1x128xf32> to vector<1x128xf32>
    %10 = vector.broadcast %9 : vector<1x128xf32> to vector<8x128xf32>
    %cst_4 = arith.constant 0.000000e+00 : f32
    %11 = vector.broadcast %cst_4 : f32 to vector<8x128xf32>
    %12 = arith.select %8, %10, %11 : vector<8x128xi1>, vector<8x128xf32>
    %c0_5 = arith.constant 0 : index
    %c0_6 = arith.constant 0 : index
    %13 = vector.load %arg4[%c0_5, %c0_6] : memref<8x128xf32, #tpu.memory_space<vmem>>, vector<8x128xf32>
    tpu.vector_store %arg4[%c0_5, %c0_6], %12 {strides = array<i32>} : memref<8x128xf32, #tpu.memory_space<vmem>>, vector<8x128xf32>,
    return
  }
  func.func @transform_0(%arg0: i32) -> i32 {
    %c0_i32 = arith.constant 0 : i32
    %c0_i32_0 = arith.constant 0 : i32
    return %c0_i32 : i32
  }
  func.func @transform_1(%arg0: i32) -> (i32, i32) {
    %c0_i32 = arith.constant 0 : i32
    %c0_i32_0 = arith.constant 0 : i32
    return %arg0, %c0_i32 : i32, i32
  }
  func.func @transform_2(%arg0: i32) -> (i32, i32) {
    %c0_i32 = arith.constant 0 : i32
    %c0_i32_0 = arith.constant 0 : i32
    return %arg0, %c0_i32 : i32, i32
  }
  func.func @transform_3(%arg0: i32) -> (i32, i32) {
    %c0_i32 = arith.constant 0 : i32
    %c0_i32_0 = arith.constant 0 : i32
    return %arg0, %c0_i32 : i32, i32
  }
}

</mosaic_0001>

<bundles_post_ra>
// kernel: average_reward_baseline.1
= control target key start
LH: loop header
LB: loop body
LE: loop exit
PB: predicated region body
PF: predicated region fallthrough
CT: control target
= control target key end

     0   :  { %v24_v3 = vlaneseq  ;;  %s69_s0 = inlined_call_operand.<no memory space> [shape: f32[1], index: 0, kind: input, shape index: {}]   ;;  %s70_s2 = inlined_call_operand.vmem [shape: f32[8,128], index: 2, kind: output, shape index: {0}]   ;;  %s71_s1 = inlined_call_operand.vmem [shape: f32[8,128], index: 1, kind: input, shape index: {}]   ;;  %s72_s3 = inlined_call_operand.vmem [shape: f32[8,128], index: 3, kind: output, shape index: {1}]  }
   0x1   :  { %v15_v0 = vstv %s69_s0  ;;  %v17_v1 = vld [vmem:[%s71_s1] sm:$0xff] }
   0x2   :  { %16 = vst [vmem:[%s70_s2] sm:$0xff] %v15_v0  ;;  %v18_v2 = vrot.slane %v17_v1, 4  ;;  %v25_v6 = vshrl.u32 %v24_v3, 7 }
   0x4   :  { %v19_v4 = vadd.f32 %v18_v2, %v17_v1  ;;  %vm26_vm0 = vcmp.eq.s32.totalorder %v25_v6, 0 }
   0x6   :  { %v20_v5 = vrot.slane %v19_v4, 2 }
   0x8   :  { %v21_v7 = vadd.f32 %v20_v5, %v19_v4 }
   0xa   :  { %v22_v8 = vrot.slane %v21_v7, 1 }
   0xc   :  { %v23_v9 = vadd.f32 %v22_v8, %v21_v7 }
   0xe   :  { %v27_v10 = vsel %vm26_vm0, %v23_v9, 0.0 }
   0xf   :  { %28 = vst [vmem:[%s72_s3] sm:$0xff] %v27_v10 }

</bundles_post_ra>
